<compile_context>
chip_gen: v6e
topology: v6e:2x2x1
jax: 0.10.0
libtpu: 0.0.40
codegen_flags: <defaults>
</compile_context>

<pallas_src>
import jax
import jax.numpy as jnp
from jax.experimental import pallas as pl
from jax.experimental.pallas import tpu as pltpu

LANE = 128  # TPU lane width / MXU tile edge


def _round_up(x, m):
    return ((x + m - 1) // m) * m


def qnetwork_kernel(x_ref, w1_ref, b1_ref, w2_ref, b2_ref, w3_ref, b3_ref, out_ref):
    # One batch tile per grid point; weights/biases are VMEM-resident blocks.
    prec = jax.lax.Precision.HIGHEST
    x = x_ref[...]                                                    # (TB, S) f32

    # Layer 1: Linear + ReLU  (true K = state_dim; no K padding)
    h1 = jnp.dot(x, w1_ref[...], precision=prec,
                 preferred_element_type=jnp.float32) + b1_ref[...]
    h1 = jnp.maximum(h1, 0.0)

    # Layer 2: Linear + ReLU  (hidden dim padded to 128 lanes)
    h2 = jnp.dot(h1, w2_ref[...], precision=prec,
                 preferred_element_type=jnp.float32) + b2_ref[...]
    h2 = jnp.maximum(h2, 0.0)

    # Layer 3: Linear  (true N = action_dim -> narrow HBM writeback)
    out = jnp.dot(h2, w3_ref[...], precision=prec,
                  preferred_element_type=jnp.float32) + b3_ref[...]
    out_ref[...] = out.astype(out_ref.dtype)


def _choose_batch_tiling(B, tb_max):
    """Pick (TB, n_tiles): TB multiple of 8, TB <= ~tb_max, minimal batch padding
    (grid nearly divides B), and >= 2 grid steps when possible (v7x has 2 TCs;
    also gives the x/out pipeline something to overlap)."""
    B8 = _round_up(B, 8)
    n = pl.cdiv(B8, tb_max)          # min number of tiles honoring tb_max
    if B8 >= 16:
        n = max(n, 2)
    TB = _round_up(pl.cdiv(B8, n), 8)
    n = pl.cdiv(B8, TB)
    return TB, n


def qnetwork_forward(x, prepped, tb_max=4096):
    """x: (B, state_dim) float32.  prepped: hidden-dim-padded params from prep_params()."""
    w1, b1, w2, b2, w3, b3 = (prepped[k] for k in ("w1", "b1", "w2", "b2", "w3", "b3"))
    B, S = x.shape
    assert w1.shape[0] == S
    Hp = w1.shape[1]
    A = w3.shape[1]

    TB, n_tiles = _choose_batch_tiling(B, tb_max)
    B_pad = TB * n_tiles

    x = x.astype(jnp.float32)
    if B_pad != B:  # pad rows only; sliced off below (zero rows -> bias/ReLU, harmless)
        x = jnp.zeros((B_pad, S), jnp.float32).at[:B].set(x)

    resident = lambda shape: pl.BlockSpec(shape, lambda i: (0, 0))  # VMEM-resident across grid

    out_pad = pl.pallas_call(
        qnetwork_kernel,
        out_shape=jax.ShapeDtypeStruct((B_pad, A), jnp.float32),
        grid=(n_tiles,),
        in_specs=[
            pl.BlockSpec((TB, S), lambda i: (i, 0)),   # x: streamed per batch tile, narrow lanes
            resident((S, Hp)), resident((1, Hp)),      # w1, b1
            resident((Hp, Hp)), resident((1, Hp)),     # w2, b2
            resident((Hp, A)), resident((1, A)),       # w3, b3
        ],
        out_specs=pl.BlockSpec((TB, A), lambda i: (i, 0)),  # narrow (action_dim) writeback
        compiler_params=pltpu.CompilerParams(
            dimension_semantics=("parallel",),          # megacore / TC sharding of batch
        ),
    )(x, w1, b1, w2, b2, w3, b3)

    return out_pad[:B, :]


def init_params(key, state_dim, action_dim, hidden_dim):
    """Deterministic synthetic init (PyTorch nn.Linear-style uniform fan-in bounds).

    Weights are (in_features, out_features); biases are (1, out_features)."""
    ks = jax.random.split(key, 6)

    def lin(kw, kb, fan_in, fan_out):
        bound = 1.0 / jnp.sqrt(fan_in)
        w = jax.random.uniform(kw, (fan_in, fan_out), jnp.float32, -bound, bound)
        b = jax.random.uniform(kb, (1, fan_out), jnp.float32, -bound, bound)
        return w, b

    w1, b1 = lin(ks[0], ks[1], state_dim, hidden_dim)
    w2, b2 = lin(ks[2], ks[3], hidden_dim, hidden_dim)
    w3, b3 = lin(ks[4], ks[5], hidden_dim, action_dim)
    return {"w1": w1, "b1": b1, "w2": w2, "b2": b2, "w3": w3, "b3": b3}


def prep_params(params):
    """Zero-pad ONLY the hidden dims up to a multiple of 128 lanes (done once at
    init/load time).  state_dim / action_dim stay at their true sizes so HBM
    traffic for x / out is not inflated.  Zero pads keep padded hidden units
    exactly 0 through the ReLUs, so the math matches the unpadded network."""
    def pad2(a, rows, cols):
        out = jnp.zeros((rows, cols), dtype=jnp.float32)
        return out.at[: a.shape[0], : a.shape[1]].set(a.astype(jnp.float32))

    S, H = params["w1"].shape
    A = params["w3"].shape[1]
    Hp = _round_up(H, LANE)

    return {
        "w1": pad2(params["w1"], S, Hp),  "b1": pad2(params["b1"], 1, Hp),
        "w2": pad2(params["w2"], Hp, Hp), "b2": pad2(params["b2"], 1, Hp),
        "w3": pad2(params["w3"], Hp, A),  "b3": pad2(params["b3"], 1, A),
    }


if __name__ == "__main__":
    state_dim, action_dim, hidden_dim = 16, 4, 32
    batch = 12  # not a multiple of the tile -> exercises pad-row handling and a 2-step grid

    key = jax.random.PRNGKey(0)
    kx, kp = jax.random.split(key)

    x = jax.random.normal(kx, (batch, state_dim), jnp.float32)
    params = init_params(kp, state_dim, action_dim, hidden_dim)
    prepped = prep_params(params)  # done once, reused across calls

    out = qnetwork_forward(x, prepped)
    jax.block_until_ready(out)

    # Reference check in plain JAX (same math as the PyTorch nn.Sequential),
    # using the same HIGHEST matmul precision as the kernel.
    prec = jax.lax.Precision.HIGHEST
    h = jnp.maximum(jnp.dot(x, params["w1"], precision=prec) + params["b1"], 0.0)
    h = jnp.maximum(jnp.dot(h, params["w2"], precision=prec) + params["b2"], 0.0)
    ref = jnp.dot(h, params["w3"], precision=prec) + params["b3"]

    assert out.shape == (batch, action_dim)
    assert jnp.allclose(out, ref, atol=1e-4, rtol=1e-4), float(jnp.max(jnp.abs(out - ref)))

    print("KERNEL_OK")
</pallas_src>

<mosaic_0001>
module attributes {stable_mosaic.version = 11 : i64} {
  func.func @qnetwork_kernel(%arg0: i32, %arg1: memref<8x16xf32, #tpu.memory_space<vmem>>, %arg2: memref<16x128xf32, #tpu.memory_space<vmem>>, %arg3: memref<1x128xf32, #tpu.memory_space<vmem>>, %arg4: memref<128x128xf32, #tpu.memory_space<vmem>>, %arg5: memref<1x128xf32, #tpu.memory_space<vmem>>, %arg6: memref<128x4xf32, #tpu.memory_space<vmem>>, %arg7: memref<1x4xf32, #tpu.memory_space<vmem>>, %arg8: memref<8x4xf32, #tpu.memory_space<vmem>>) attributes {dimension_semantics = [#tpu.dimension_semantics<parallel>], iteration_bounds = array<i64: 2>, scalar_prefetch = 0 : i64, scratch_operands = 0 : i64, tpu.core_type = #tpu.core_type<tc>, window_params = [{transform_indices = @transform_0, window_bounds = array<i64: 8, 16>}, {pipeline_mode = #tpu.pipeline_mode<synchronous>, transform_indices = @transform_1, window_bounds = array<i64: 16, 128>}, {pipeline_mode = #tpu.pipeline_mode<synchronous>, transform_indices = @transform_2, window_bounds = array<i64: 1, 128>}, {pipeline_mode = #tpu.pipeline_mode<synchronous>, transform_indices = @transform_3, window_bounds = array<i64: 128, 128>}, {pipeline_mode = #tpu.pipeline_mode<synchronous>, transform_indices = @transform_4, window_bounds = array<i64: 1, 128>}, {pipeline_mode = #tpu.pipeline_mode<synchronous>, transform_indices = @transform_5, window_bounds = array<i64: 128, 4>}, {pipeline_mode = #tpu.pipeline_mode<synchronous>, transform_indices = @transform_6, window_bounds = array<i64: 1, 4>}, {transform_indices = @transform_7, window_bounds = array<i64: 8, 4>}]} {
    %c0 = arith.constant 0 : index
    %c0_0 = arith.constant 0 : index
    %0 = vector.load %arg1[%c0, %c0_0] : memref<8x16xf32, #tpu.memory_space<vmem>>, vector<8x16xf32>
    %c0_1 = arith.constant 0 : index
    %c0_2 = arith.constant 0 : index
    %1 = vector.load %arg2[%c0_1, %c0_2] : memref<16x128xf32, #tpu.memory_space<vmem>>, vector<16x128xf32>
    %cst = arith.constant dense<0.000000e+00> : vector<8x128xf32>
    %2 = tpu.matmul %0, %1, %cst {dimension_numbers = #tpu.dot_dimension_numbers<[1], [0], [0], [1], [0, 0, 1, 1], [], []>, precision = #tpu.contract_precision<fp32>} : vector<8x16xf32>, vector<16x128xf32>, vector<8x128xf32> -> vector<8x128xf32>
    %c0_3 = arith.constant 0 : index
    %c0_4 = arith.constant 0 : index
    %3 = vector.load %arg3[%c0_3, %c0_4] : memref<1x128xf32, #tpu.memory_space<vmem>>, vector<1x128xf32>
    %4 = vector.broadcast %3 : vector<1x128xf32> to vector<8x128xf32>
    %5 = arith.addf %2, %4 : vector<8x128xf32>
    %cst_5 = arith.constant 0.000000e+00 : f32
    %6 = vector.broadcast %cst_5 : f32 to vector<8x128xf32>
    %7 = arith.maximumf %5, %6 : vector<8x128xf32>
    %c0_6 = arith.constant 0 : index
    %c0_7 = arith.constant 0 : index
    %8 = vector.load %arg4[%c0_6, %c0_7] : memref<128x128xf32, #tpu.memory_space<vmem>>, vector<128x128xf32>
    %cst_8 = arith.constant dense<0.000000e+00> : vector<8x128xf32>
    %9 = tpu.matmul %7, %8, %cst_8 {dimension_numbers = #tpu.dot_dimension_numbers<[1], [0], [0], [1], [0, 0, 1, 1], [], []>, precision = #tpu.contract_precision<fp32>} : vector<8x128xf32>, vector<128x128xf32>, vector<8x128xf32> -> vector<8x128xf32>
    %c0_9 = arith.constant 0 : index
    %c0_10 = arith.constant 0 : index
    %10 = vector.load %arg5[%c0_9, %c0_10] : memref<1x128xf32, #tpu.memory_space<vmem>>, vector<1x128xf32>
    %11 = vector.broadcast %10 : vector<1x128xf32> to vector<8x128xf32>
    %12 = arith.addf %9, %11 : vector<8x128xf32>
    %cst_11 = arith.constant 0.000000e+00 : f32
    %13 = vector.broadcast %cst_11 : f32 to vector<8x128xf32>
    %14 = arith.maximumf %12, %13 : vector<8x128xf32>
    %c0_12 = arith.constant 0 : index
    %c0_13 = arith.constant 0 : index
    %15 = vector.load %arg6[%c0_12, %c0_13] : memref<128x4xf32, #tpu.memory_space<vmem>>, vector<128x4xf32>
    %cst_14 = arith.constant dense<0.000000e+00> : vector<8x4xf32>
    %16 = tpu.matmul %14, %15, %cst_14 {dimension_numbers = #tpu.dot_dimension_numbers<[1], [0], [0], [1], [0, 0, 1, 1], [], []>, precision = #tpu.contract_precision<fp32>} : vector<8x128xf32>, vector<128x4xf32>, vector<8x4xf32> -> vector<8x4xf32>
    %c0_15 = arith.constant 0 : index
    %c0_16 = arith.constant 0 : index
    %17 = vector.load %arg7[%c0_15, %c0_16] : memref<1x4xf32, #tpu.memory_space<vmem>>, vector<1x4xf32>
    %18 = vector.broadcast %17 : vector<1x4xf32> to vector<8x4xf32>
    %19 = arith.addf %16, %18 : vector<8x4xf32>
    %c0_17 = arith.constant 0 : index
    %c0_18 = arith.constant 0 : index
    %20 = vector.load %arg8[%c0_17, %c0_18] : memref<8x4xf32, #tpu.memory_space<vmem>>, vector<8x4xf32>
    tpu.vector_store %arg8[%c0_17, %c0_18], %19 {strides = array<i32>} : memref<8x4xf32, #tpu.memory_space<vmem>>, vector<8x4xf32>,
    return
  }
  func.func @transform_0(%arg0: i32) -> (i32, i32) {
    %c0_i32 = arith.constant 0 : i32
    %c0_i32_0 = arith.constant 0 : i32
    return %arg0, %c0_i32 : i32, i32
  }
  func.func @transform_1(%arg0: i32) -> (i32, i32) {
    %c0_i32 = arith.constant 0 : i32
    %c0_i32_0 = arith.constant 0 : i32
    %c0_i32_1 = arith.constant 0 : i32
    return %c0_i32, %c0_i32_0 : i32, i32
  }
  func.func @transform_2(%arg0: i32) -> (i32, i32) {
    %c0_i32 = arith.constant 0 : i32
    %c0_i32_0 = arith.constant 0 : i32
    %c0_i32_1 = arith.constant 0 : i32
    return %c0_i32, %c0_i32_0 : i32, i32
  }
  func.func @transform_3(%arg0: i32) -> (i32, i32) {
    %c0_i32 = arith.constant 0 : i32
    %c0_i32_0 = arith.constant 0 : i32
    %c0_i32_1 = arith.constant 0 : i32
    return %c0_i32, %c0_i32_0 : i32, i32
  }
  func.func @transform_4(%arg0: i32) -> (i32, i32) {
    %c0_i32 = arith.constant 0 : i32
    %c0_i32_0 = arith.constant 0 : i32
    %c0_i32_1 = arith.constant 0 : i32
    return %c0_i32, %c0_i32_0 : i32, i32
  }
  func.func @transform_5(%arg0: i32) -> (i32, i32) {
    %c0_i32 = arith.constant 0 : i32
    %c0_i32_0 = arith.constant 0 : i32
    %c0_i32_1 = arith.constant 0 : i32
    return %c0_i32, %c0_i32_0 : i32, i32
  }
  func.func @transform_6(%arg0: i32) -> (i32, i32) {
    %c0_i32 = arith.constant 0 : i32
    %c0_i32_0 = arith.constant 0 : i32
    %c0_i32_1 = arith.constant 0 : i32
    return %c0_i32, %c0_i32_0 : i32, i32
  }
  func.func @transform_7(%arg0: i32) -> (i32, i32) {
    %c0_i32 = arith.constant 0 : i32
    %c0_i32_0 = arith.constant 0 : i32
    return %arg0, %c0_i32 : i32, i32
  }
}

</mosaic_0001>

<bundles_post_ra>
// kernel: tpu_custom_call.1
= control target key start
LH: loop header
LB: loop body
LE: loop exit
PB: predicated region body
PF: predicated region fallthrough
CT: control target
= control target key end

     0   :  { %12 = vsyncpa [#allocation3], 0  ;;  %s4064_s0 = inlined_call_operand.hbm [shape: f32[16,16], index: 0, kind: input, shape index: {}]   ;;  %s4065_s1 = inlined_call_operand.hbm [shape: f32[16,128], index: 1, kind: input, shape index: {}]   ;;  %s4066_s2 = inlined_call_operand.vmem [shape: f32[1,128], index: 2, kind: input, shape index: {}]   ;;  %s4067_s3 = inlined_call_operand.vmem [shape: f32[128,128], index: 3, kind: input, shape index: {}]   ;;  %s4068_s4 = inlined_call_operand.vmem [shape: f32[1,128], index: 4, kind: input, shape index: {}]   ;;  %s4069_s5 = inlined_call_operand.vmem [shape: f32[128,4], index: 5, kind: input, shape index: {}]   ;;  %s4070_s6 = inlined_call_operand.vmem [shape: f32[1,4], index: 6, kind: input, shape index: {}]   ;;  %s4071_s7 = inlined_call_operand.vmem [shape: f32[16,4], index: 7, kind: output, shape index: {}]  }
   0x1   :  { %14 = vsyncpa [#allocation3 + $0x1], 0 }
   0x2   :  { %15 = vsyncpa [#allocation5], 0  ;;  %s3082_s24 = smov 0   ;;  %s3084_s25 = smov 0  }
   0x3   :  { %s3086_s26 = smov 0   ;;  %s3088_s27 = smov 0  }
   0x4 LB: > { %s3101_s28 = sadd.s32 4294967295, %s3034_s27   ;;  %p41_p0 = scmp.ne.s32.totalorder %s3026_s25, %s3022_s24  ;;  %s3034_s27 = sphi %s3088_s27, %s4106_s27   ;;  %s3030_s26 = sphi %s3086_s26, %s4105_s26   ;;  %s3026_s25 = sphi %s3084_s25, %s4104_s25   ;;  %s3022_s24 = sphi %s3082_s24, %s4103_s24  }
   0x5   : > { %p4072_p1 = scmp.eq.s32.totalorder %s3101_s28, 0  ;;  %p2190_p2 = scmp.ge.s32.totalorder %s3034_s27, 1 }
   0x6   : > { %p204_p3 = scmp.lt.s32.totalorder %s3034_s27, 3  ;;  %s3036_s8 = smov [#allocation4]  }
   0x7   : > { %p3109_p4 = por %p4072_p1, %p41_p0  ;;  %s216_s9 = sshll.u32 %s3036_s8, 4  ;;  %s217_s9 = int_to_ptr.vmem [resolvable:$true] %s216_s9 }
   0x8   : > { %p3113_p5 = pnand %p2190_p2, %p204_p3  ;;  %s3126_s11 = sadd.s32 1, %s3034_s27  }
   0x9   : > { %s4085_s29 = scalar_select %p3109_p4, 1, 0 }
   0xa   : > { %s4086_s30 = scalar_select %p3113_p5, 1, 0 }
   0xb   : > { %p2894_p6 = pneg %p3113_p5  ;;  %s28_s12 = sadd.s32 1, %s3030_s26 }
   0xc   : > { %s25_s13 = ssub.s32 %s3034_s27, %s3126_s11  ;;  %s2953_s14 = scalar_lea.vmem %s217_s9, 256 }
   0xd   : > { %p3121_p7 = pnand %p2894_p6, %p4072_p1  ;;  %p2954_p9 = scmp.ne.s32.totalorder %s217_s9, %s2953_s14 }
   0xe   : > { %p2961_p12 = scmp.lt.s32.totalorder %s217_s9, %s217_s9  ;;  %p2962_p13 = scmp.lt.s32.totalorder %s2953_s14, %s2953_s14 }
   0xf   : > { %p2944_p8 = pneg %p3121_p7 }
  0x10   : > { %p2963_p0 = por %p2962_p13, %p2961_p12 }
  0x11   : > { %p2956_p10 = pnand %p2954_p9, %p2944_p8 }
  0x13   : > { %p2957_p11 = pneg %p2956_p10 }
  0x15   : > { %p2964_p2 = pnand %p2963_p0, %p2957_p11 }
  0x17   : > { %2967 = shalt.err (!%p2964_p2)
}
  0x18   : > { %s3037_s15 = smov 128   ;;  %s3038_s16 = smov 8  }
  0x19   : > { %2897 = dma.hbm_to_vmem [thread:$0]  (!%p3121_p7), %s4065_s1, 256, %s217_s9, [#allocation5], %s3037_s15, %s3037_s15, %s3038_s16  }
  0x1a   : > { %p26_p3 = scmp.eq.s32.totalorder %s25_s13, 0  ;;  %p35_p6 = scmp.ne.s32.totalorder %s3030_s26, %s3026_s25 }
  0x1b   : > { %p36_p8 = scmp.eq.s32.totalorder %s3034_s27, 0  ;;  %p2903_p9 = scmp.lt.s32.totalorder %s3034_s27, 2 }
  0x1c   : > { %s3143_s19 = scalar_select %p26_p3, %s3030_s26, %s28_s12  }
  0x1d   : > { %p37_p10 = por %p36_p8, %p35_p6  ;;  %s245_s20 = sand.u32 1, %s3030_s26  }
  0x1e   : > { %s2193_s21 = sshll.u32 %s245_s20, 3  ;;  %s2194_s22 = sshll.u32 %s3034_s27, 7 }
  0x1f   : > { %s3150_s8 = scalar_lea.hbm %s4064_s0, %s2194_s22  ;;  %s249_s10 = scalar_lea.vmem [#allocation2], %s2193_s21 }
  0x20   : > { %s256_s9 = sshll.u32 %s249_s10, 4  ;;  %p3152_p7 = pnand %p2903_p9, %p37_p10  ;;  %s257_s9 = int_to_ptr.vmem [resolvable:$true] %s256_s9 }
  0x21   : > { %s246_s12 = scalar_lea.sflag [#allocation3], %s245_s20  ;;  %s2968_s14 = scalar_lea.hbm %s3150_s8, 128 }
  0x22   : > { %p2969_p11 = scmp.ne.s32.totalorder %s3150_s8, %s2968_s14  ;;  %p2970_p12 = pneg %p3152_p7 }
  0x23   : > { %s2973_s16 = scalar_lea.hbm %s4064_s0, 256  ;;  %p2974_p2 = scmp.lt.s32.totalorder %s3150_s8, %s4064_s0 }
  0x24   : > { %p2971_p13 = pnand %p2970_p12, %p2969_p11  ;;  %p2975_p3 = scmp.lt.s32.totalorder %s2973_s16, %s2968_s14 }
  0x26   : > { %p2972_p0 = pneg %p2971_p13  ;;  %p2976_p6 = por %p2975_p3, %p2974_p2 }
  0x28   : > { %p2977_p8 = pnand %p2976_p6, %p2972_p0 }
  0x2a   : > { %2980 = shalt.err (!%p2977_p8)
}
  0x2b   : > { %s2981_s21 = scalar_lea.vmem %s257_s9, 128  ;;  %s3039_s20 = smov [#allocation2]  }
  0x2c   : > { %p2982_p9 = scmp.ne.s32.totalorder %s257_s9, %s2981_s21  ;;  %s2986_s22 = sshll.u32 %s3039_s20, 4  ;;  %s2987_s22 = int_to_ptr.vmem [resolvable:$false] %s2986_s22 }
  0x2d   : > { %s2988_s23 = scalar_lea.vmem %s2987_s22, 256  ;;  %p2989_p11 = scmp.lt.s32.totalorder %s257_s9, %s2987_s22 }
  0x2e   : > { %p2984_p10 = pnand %p2982_p9, %p2970_p12  ;;  %p2990_p13 = scmp.lt.s32.totalorder %s2988_s23, %s2981_s21 }
  0x30   : > { %p2985_p1 = pneg %p2984_p10  ;;  %p2991_p4 = por %p2990_p13, %p2989_p11 }
  0x32   : > { %p2992_p5 = pnand %p2991_p4, %p2985_p1 }
  0x34   : > { %2995 = shalt.err (!%p2992_p5)
}
  0x35   : > { %2901 = dma.hbm_to_vmem [thread:$0]  (!%p3152_p7), %s3150_s8, 128, %s257_s9, %s246_s12  }
  0x36   : > { %p4089_p0 = scmp.ne.s32.totalorder %s4086_s30, 0 }
  0x37   : > { %s267_s24 = sand.u32 (!%p4089_p0), 1, %s3026_s25   ;;  %p4090_p12 = scmp.ne.s32.totalorder (!%p4089_p0), %s4085_s29, 0 }
  0x38   : > { %265 = sbr.rel (%p4089_p0) target bundleno = 836 (0x344), region = 48  ;;  %s2196_s10 = sshll.u32 (!%p4089_p0), %s267_s24, 3 }
  0x39   : > { %s268_s14 = scalar_lea.sflag (!%p4089_p0), [#allocation3], %s267_s24  ;;  %s271_s27 = scalar_lea.vmem (!%p4089_p0), [#allocation2], %s2196_s10 }
  0x3d   : > { %3013 = dma.done.wait (%p4090_p12), %s268_s14, 128  }
  0x3e   : > { %3015 = vsyncadd (%p4090_p12), %s268_s14, 4294967168  ;;  %p4091_p1 = scmp.eq.s32.totalorder %s3101_s28, 0 }
  0x40   : > { %3017 = dma.done.wait (%p4091_p1), [#allocation5], 256   ;;  %p4092_p4 = pmov %p4091_p1 }
  0x41   : > { %v3040_v0 = vmov 0.0   ;;  %vm3041_vm0 = vmmov 0   ;;  %vm319_vm1 = vcmask 130048   ;;  %v311_v1 = vld [vmem:[#allocation4 + $0x8] sm:$0xff]  ;;  %v310_v2 = vld [vmem:[#allocation4] sm:$0xff]  ;;  %v309_v3 = vld [vmem:[%s271_s27] sm:$0xff] }
  0x42   : > { %3019 = vsyncadd (%p4092_p4), [#allocation5], 4294967040  ;;  %2426 = vmatprep.subr.mxu0 %v3040_v0  ;;  %2433 = vmatprep.subr.mxu1 %v3040_v0  ;;  %v3187_v4 = vand.u32 4294901760, %v311_v1  ;;  %v3189_v5 = vand.u32 4294901760, %v310_v2  ;;  %v321_v6 = vsel %vm319_vm1, %v309_v3, 0  ;;  %v798_v10 = vld [vmem:[%s4067_s3 + $0x78] sm:$0xff] }
  0x43   : > { %2430 = vmatprep.mubr.msk.f32.mxu0 %vm3041_vm0, %v3040_v0  ;;  %2437 = vmatprep.mubr.msk.f32.mxu1 %vm3041_vm0, %v3040_v0  ;;  %v3191_v7 = vand.u32 4294901760, %v321_v6  ;;  %v797_v14 = vld [vmem:[%s4067_s3 + $0x70] sm:$0xff]  ;;  %v3206_v16 = vand.u32 4294901760, %v798_v10  ;;  %v796_v19 = vld [vmem:[%s4067_s3 + $0x68] sm:$0xff]  ;;  %v795_v24 = vld [vmem:[%s4067_s3 + $0x60] sm:$0xff]  ;;  %p305_p5 = scmp.lt.s32.totalorder %s3101_s28, 1 }
  0x44   : > { %2427 = vmatpush3.msra.mxu0 %v3187_v4  ;;  %v430_v8 = vsub.f32 %v311_v1, %v3187_v4  ;;  %v437_v9 = vsub.f32 %v310_v2, %v3189_v5  ;;  %v3211_v21 = vand.u32 4294901760, %v797_v14  ;;  %v3219_v27 = vand.u32 4294901760, %v796_v19  ;;  %v794_v28 = vld [vmem:[%s4067_s3 + $0x58] sm:$0xff]  ;;  %v793_v31 = vld [vmem:[%s4067_s3 + $0x50] sm:$0xff]  ;;  %v792_v35 = vld [vmem:[%s4067_s3 + $0x48] sm:$0xff] }
  0x45   : > { %2428 = vmatprep.subr.mxu0 %v3040_v0  ;;  %v391_v11 = vsub.f32 %v321_v6, %v3191_v7  ;;  %v3217_v26 = vsub.f32 %v798_v10, %v3206_v16  ;;  %v3228_v30 = vand.u32 4294901760, %v795_v24  ;;  %v3239_v34 = vand.u32 4294901760, %v794_v28  ;;  %v791_v39 = vld [vmem:[%s4067_s3 + $0x40] sm:$0xff]  ;;  %v788_v10 = vld [vmem:[%s4067_s3 + $0x28] sm:$0xff]  ;;  %s4108_s28 = smov (!%p305_p5, %s3101_s28), 1 }
  0x46   : > { %2429 = vmatpush3.msra.mxu0 %v3189_v5  ;;  %v431_v12 = vand.u32 4294901760, %v430_v8  ;;  %v438_v13 = vand.u32 4294901760, %v437_v9  ;;  %v3226_v29 = vsub.f32 %v797_v14, %v3211_v21  ;;  %v3237_v33 = vsub.f32 %v796_v19, %v3219_v27  ;;  %v787_v14 = vld [vmem:[%s4067_s3 + $0x20] sm:$0xff]  ;;  %s2198_s14 = sshll.u32 %s4108_s28, 3 }
  0x47   : > { %v392_v15 = vand.u32 4294901760, %v391_v11  ;;  %2440 = vmatprep.subr.mxu0 %v3040_v0  ;;  %v900_v32 = vand.u32 4294901760, %v3217_v26  ;;  %v3250_v37 = vsub.f32 %v795_v24, %v3228_v30  ;;  %v3252_v38 = vand.u32 4294901760, %v793_v31  ;;  %s308_s30 = scalar_lea.vmem %s4071_s7, %s2198_s14 }
  0x48   : > { %v432_v17 = vsub.f32 %v430_v8, %v431_v12  ;;  %v439_v18 = vsub.f32 %v437_v9, %v438_v13  ;;  %v907_v36 = vand.u32 4294901760, %v3226_v29  ;;  %v914_v41 = vand.u32 4294901760, %v3237_v33 }
  0x49   : > { %v393_v20 = vsub.f32 %v391_v11, %v392_v15  ;;  %v901_v40 = vsub.f32 %v3217_v26, %v900_v32  ;;  %v3265_v42 = vsub.f32 %v794_v28, %v3239_v34  ;;  %v3267_v43 = vand.u32 4294901760, %v792_v35 }
  0x4a   : > { %v433_v22 = vand.u32 4294901760, %v432_v17  ;;  %v440_v23 = vand.u32 4294901760, %v439_v18  ;;  %v908_v44 = vsub.f32 %v3226_v29, %v907_v36  ;;  %v921_v45 = vand.u32 4294901760, %v3250_v37 }
  0x4b   : > { %v394_v25 = vand.u32 4294901760, %v393_v20  ;;  %v3277_v46 = vsub.f32 %v793_v31, %v3252_v38  ;;  %v3279_v47 = vand.u32 4294901760, %v791_v39  ;;  %v902_v48 = vand.u32 4294901760, %v901_v40  ;;  %v786_v20 = vld [vmem:[%s4067_s3 + $0x18] sm:$0xff]  ;;  %v785_v31 = vld [vmem:[%s4067_s3 + $0x10] sm:$0xff] }
  0x4c   : > { %2434 = vmatpush3.msra.mxu1 %v433_v22  ;;  %v915_v49 = vsub.f32 %v3237_v33, %v914_v41  ;;  %v928_v50 = vand.u32 4294901760, %v3265_v42  ;;  %v3290_v51 = vsub.f32 %v792_v35, %v3267_v43  ;;  %v909_v52 = vand.u32 4294901760, %v908_v44 }
  0x4d   : > { %2431 = vmatmul.mubr.f32.vlgmr.msra.gmra.mxu0 %v394_v25  ;;  %2435 = vmatprep.subr.mxu1 %v3040_v0  ;;  %v922_v53 = vsub.f32 %v3250_v37, %v921_v45  ;;  %v935_v54 = vand.u32 4294901760, %v3277_v46  ;;  %v3302_v55 = vsub.f32 %v791_v39, %v3279_v47  ;;  %v3385_v19 = vand.u32 4294901760, %v787_v14 }
  0x4e   : > { %2436 = vmatpush3.msra.mxu1 %v440_v23  ;;  %2441 = vmatpush3.msra.mxu0 %v430_v8  ;;  %v916_v56 = vand.u32 4294901760, %v915_v49  ;;  %v929_v57 = vsub.f32 %v3265_v42, %v928_v50  ;;  %v942_v58 = vand.u32 4294901760, %v3290_v51  ;;  %v3400_v28 = vand.u32 4294901760, %v786_v20  ;;  %v784_v49 = vld [vmem:[%s4067_s3 + $0x8] sm:$0xff] }
  0x4f   : > { %2438 = vmatmul.mubr.f32.vlgmr.msra.gmra.mxu1 %v3191_v7  ;;  %2442 = vmatprep.subr.mxu0 %v3040_v0  ;;  %v923_v59 = vand.u32 4294901760, %v922_v53  ;;  %v936_v60 = vsub.f32 %v3277_v46, %v935_v54  ;;  %v949_v61 = vand.u32 4294901760, %v3302_v55  ;;  %v3397_v25 = vsub.f32 %v787_v14, %v3385_v19 }
  0x50   : > { %2447 = vmatprep.subr.mxu1 %v3040_v0  ;;  %2443 = vmatpush3.msra.mxu0 %v437_v9  ;;  %v930_v62 = vand.u32 4294901760, %v929_v57  ;;  %v943_v63 = vsub.f32 %v3290_v51, %v942_v58  ;;  %v3410_v44 = vand.u32 4294901760, %v785_v31  ;;  %v3426_v57 = vand.u32 4294901760, %v784_v49 }
  0x51   : > { %2444 = vmatprep.mubr.msk.f32.mxu0 %vm3041_vm0, %v3040_v0  ;;  %2448 = vmatpush3.msra.mxu1 %v3187_v4  ;;  %v937_v1 = vand.u32 4294901760, %v936_v60  ;;  %v950_v2 = vsub.f32 %v3302_v55, %v949_v61  ;;  %v4079_v40 = vand.u32 4294901760, %v3397_v25  ;;  %v783_v60 = vld [vmem:[%s4067_s3] sm:$0xff]  ;;  %vm2112_vm2 = vcmask 31744  }
  0x52   : > { %2445 = vmatmul.mubr.f32.vlgmr.msra.gmra.mxu0 %v391_v11  ;;  %2449 = vmatprep.subr.mxu1 %v3040_v0  ;;  %v944_v3 = vand.u32 4294901760, %v943_v63 }
  0x53   : > { %2454 = vmatprep.subr.mxu0 %v3040_v0  ;;  %2450 = vmatpush3.msra.mxu1 %v3189_v5  ;;  %v978_v53 = vsub.f32 %v3397_v25, %v4079_v40 }
  0x54   : > { %2451 = vmatprep.mubr.msk.f32.mxu1 %vm3041_vm0, %v3040_v0  ;;  %2455 = vmatpush3.msra.mxu0 %v431_v12 }
  0x55   : > { %2452 = vmatmul.mubr.f32.vlgmr.msra.gmra.mxu1 %v392_v15  ;;  %2456 = vmatprep.subr.mxu0 %v3040_v0 }
  0x56   : > { %2461 = vmatprep.subr.mxu1 %v3040_v0  ;;  %2457 = vmatpush3.msra.mxu0 %v438_v13  ;;  %v3371_v13 = vand.u32 4294901760, %v788_v10 }
  0x57   : > { %2458 = vmatprep.mubr.msk.f32.mxu0 %vm3041_vm0, %v3040_v0  ;;  %2462 = vmatpush3.msra.mxu1 %v3187_v4  ;;  %v951_v4 = vand.u32 4294901760, %v950_v2  ;;  %v3439_v2 = vand.u32 4294901760, %v783_v60 }
  0x58   : > { %2459 = vmatmul.mubr.f32.vlgmr.msra.gmra.mxu0 %v3191_v7  ;;  %2463 = vmatprep.subr.mxu1 %v3040_v0  ;;  %v3383_v18 = vsub.f32 %v788_v10, %v3371_v13 }
  0x59   : > { %2464 = vmatpush3.msra.mxu1 %v3189_v5  ;;  %2465 = vmatprep.mubr.msk.f32.mxu1 %vm3041_vm0, %v3040_v0  ;;  %v790_v5 = vld [vmem:[%s4067_s3 + $0x38] sm:$0xff] }
  0x5a   : > { %2466 = vmatmul.mubr.f32.vlgmr.msra.gmra.mxu1 %v3191_v7  ;;  %2503 = vmatprep.subr.mxu1 %v3040_v0  ;;  %v3352_v6 = vand.u32 4294901760, %v790_v5  ;;  %v789_v7 = vld [vmem:[%s4067_s3 + $0x30] sm:$0xff]  ;;  %v4080_v24 = vand.u32 4294901760, %v3383_v18 }
  0x5b   : > { %2504 = vmatpush3.msra.mxu1 %v902_v48  ;;  %2468 = vmatprep.subr.mxu0 %v3040_v0  ;;  %v3360_v9 = vand.u32 4294901760, %v789_v7  ;;  %v3414_v48 = vsub.f32 %v786_v20, %v3400_v28 }
  0x5c   : > { %2505 = vmatprep.subr.mxu1 %v3040_v0  ;;  %2469 = vmatpush3.msra.mxu0 %v3206_v16  ;;  %v3358_v8 = vsub.f32 %v790_v5, %v3352_v6  ;;  %v971_v39 = vsub.f32 %v3383_v18, %v4080_v24 }
  0x5d   : > { %2506 = vmatpush3.msra.mxu1 %v909_v52  ;;  %2470 = vmatprep.subr.mxu0 %v3040_v0  ;;  %v3369_v12 = vsub.f32 %v789_v7, %v3360_v9  ;;  %v3452_v7 = vsub.f32 %v783_v60, %v3439_v2 }
  0x5e   : > { %2507 = vmatprep.subr.mxu1 %v3040_v0  ;;  %2471 = vmatpush3.msra.mxu0 %v3211_v21  ;;  %v956_v11 = vand.u32 4294901760, %v3358_v8  ;;  %v972_v52 = vand.u32 4294901760, %v971_v39 }
  0x5f   : > { %2508 = vmatpush3.msra.mxu1 %v916_v56  ;;  %2472 = vmatprep.subr.mxu0 %v3040_v0  ;;  %v963_v17 = vand.u32 4294901760, %v3369_v12  ;;  %v3424_v56 = vsub.f32 %v785_v31, %v3410_v44  ;;  %v4075_v20 = vand.u32 4294901760, %v3452_v7 }
  0x60   : > { %2509 = vmatprep.subr.mxu1 %v3040_v0  ;;  %2473 = vmatpush3.msra.mxu0 %v3219_v27  ;;  %v957_v15 = vsub.f32 %v3358_v8, %v956_v11 }
  0x61   : > { %2510 = vmatpush3.msra.mxu1 %v923_v59  ;;  %2474 = vmatprep.subr.mxu0 %v3040_v0  ;;  %v964_v23 = vsub.f32 %v3369_v12, %v963_v17  ;;  %v4078_v59 = vand.u32 4294901760, %v3414_v48  ;;  %v4077_v63 = vand.u32 4294901760, %v3424_v56 }
  0x62   : > { %2511 = vmatprep.subr.mxu1 %v3040_v0  ;;  %2475 = vmatpush3.msra.mxu0 %v3228_v30  ;;  %v958_v22 = vand.u32 4294901760, %v957_v15 }
  0x63   : > { %2512 = vmatpush3.msra.mxu1 %v930_v62  ;;  %2476 = vmatprep.subr.mxu0 %v3040_v0  ;;  %v965_v35 = vand.u32 4294901760, %v964_v23  ;;  %v979_v62 = vand.u32 4294901760, %v978_v53  ;;  %v1006_v23 = vsub.f32 %v3452_v7, %v4075_v20 }
  0x64   : > { %2513 = vmatprep.subr.mxu1 %v3040_v0  ;;  %2477 = vmatpush3.msra.mxu0 %v3239_v34 }
  0x65   : > { %2514 = vmatpush3.msra.mxu1 %v937_v1  ;;  %2478 = vmatprep.subr.mxu0 %v3040_v0  ;;  %v3437_v1 = vsub.f32 %v784_v49, %v3426_v57  ;;  %v1007_v31 = vand.u32 4294901760, %v1006_v23 }
  0x66   : > { %2515 = vmatprep.subr.mxu1 %v3040_v0  ;;  %2479 = vmatpush3.msra.mxu0 %v3252_v38 }
  0x67   : > { %2516 = vmatpush3.msra.mxu1 %v944_v3  ;;  %2480 = vmatprep.subr.mxu0 %v3040_v0  ;;  %v985_v3 = vsub.f32 %v3414_v48, %v4078_v59  ;;  %v4076_v5 = vand.u32 4294901760, %v3437_v1 }
  0x68   : > { %2517 = vmatprep.subr.mxu1 %v3040_v0  ;;  %2481 = vmatpush3.msra.mxu0 %v3267_v43 }
  0x69   : > { %2518 = vmatpush3.msra.mxu1 %v951_v4  ;;  %2482 = vmatprep.subr.mxu0 %v3040_v0  ;;  %v992_v4 = vsub.f32 %v3424_v56, %v4077_v63  ;;  %v986_v10 = vand.u32 4294901760, %v985_v3  ;;  %v999_v15 = vsub.f32 %v3437_v1, %v4076_v5 }
  0x6a   : > { %2519 = vmatprep.subr.mxu1 %v3040_v0  ;;  %2483 = vmatpush3.msra.mxu0 %v3279_v47 }
  0x6b   : > { %2484 = vmatprep.subr.mxu0 %v3040_v0  ;;  %2535 = vmatprep.mubr.msk.f32.mxu1 %vm3041_vm0, %v3040_v0  ;;  %v993_v14 = vand.u32 4294901760, %v992_v4 }
  0x6c   : > { %2500 = vmatprep.mubr.msk.f32.mxu0 %vm3041_vm0, %v3040_v0  ;;  %2485 = vmatpush3.msra.mxu0 %v3352_v6 }
  0x6d   : > { %2486 = vmatprep.subr.mxu0 %v3040_v0  ;;  %2520 = vmatpush3.msra.mxu1 %v958_v22  ;;  %v1000_v22 = vand.u32 4294901760, %v999_v15 }
  0x6e   : > { %2487 = vmatpush3.msra.mxu0 %v3360_v9  ;;  %2521 = vmatprep.subr.mxu1 %v3040_v0 }
  0x6f   : > { %2488 = vmatprep.subr.mxu0 %v3040_v0  ;;  %2522 = vmatpush3.msra.mxu1 %v965_v35  ;;  %v2199_v35 = vld [vmem:[%s4066_s2] ss:$0 sm:$0xff] }
  0x70   : > { %2489 = vmatpush3.msra.mxu0 %v3371_v13  ;;  %2523 = vmatprep.subr.mxu1 %v3040_v0 }
  0x71   : > { %2490 = vmatprep.subr.mxu0 %v3040_v0  ;;  %2524 = vmatpush3.msra.mxu1 %v972_v52 }
  0x72   : > { %2491 = vmatpush3.msra.mxu0 %v3385_v19  ;;  %2525 = vmatprep.subr.mxu1 %v3040_v0 }
  0x73   : > { %2492 = vmatprep.subr.mxu0 %v3040_v0  ;;  %2526 = vmatpush3.msra.mxu1 %v979_v62 }
  0x74   : > { %2493 = vmatpush3.msra.mxu0 %v3400_v28  ;;  %2527 = vmatprep.subr.mxu1 %v3040_v0 }
  0x75   : > { %2494 = vmatprep.subr.mxu0 %v3040_v0  ;;  %2528 = vmatpush3.msra.mxu1 %v986_v10 }
  0x76   : > { %2495 = vmatpush3.msra.mxu0 %v3410_v44  ;;  %2529 = vmatprep.subr.mxu1 %v3040_v0 }
  0x77   : > { %2496 = vmatprep.subr.mxu0 %v3040_v0  ;;  %2530 = vmatpush3.msra.mxu1 %v993_v14 }
  0x78   : > { %2497 = vmatpush3.msra.mxu0 %v3426_v57  ;;  %2531 = vmatprep.subr.mxu1 %v3040_v0 }
  0x79   : > { %2498 = vmatprep.subr.mxu0 %v3040_v0  ;;  %2532 = vmatpush3.msra.mxu1 %v1000_v22 }
  0x7a   : > { %2499 = vmatpush3.msra.mxu0 %v3439_v2  ;;  %2533 = vmatprep.subr.mxu1 %v3040_v0 }
  0x7b   : > { %2538 = vmatprep.subr.mxu0 %v3040_v0  ;;  %2534 = vmatpush3.msra.mxu1 %v1007_v31 }
  0x7c   : > { %2573 = vmatprep.subr.mxu1 %v3040_v0 }
 0x10d   : > { %v396_v39 = vpop.f32.mrf.mxu0 }
 0x10e   : > { %v397_v49 = vadd.f32 %v2199_v35, %v396_v39 }
 0x10f   : > { %v2432_v52 = vpop.f32.mrf.mxu0  ;;  %v477_v53 = vpop.f32.mrf.mxu1 }
 0x110   : > { %v478_v60 = vadd.f32 %v477_v53, %v397_v49 }
 0x111   : > { %v2439_v62 = vpop.f32.mrf.mxu1 }
 0x112   : > { %v553_v3 = vpop.f32.mrf.mxu0  ;;  %v1455_v62 = vld [vmem:[%s4069_s5 + $0x38] sm:$0xff] }
 0x113   : > { %v554_v4 = vadd.f32 %v553_v3, %v478_v60 }
 0x114   : > { %v2446_v10 = vpop.f32.mrf.mxu0 }
 0x115   : > { %v628_v14 = vpop.f32.mrf.mxu1  ;;  %v3755_v10 = vand.u32 4294901760, %v1455_v62 }
 0x116   : > { %v629_v15 = vadd.f32 %v628_v14, %v554_v4  ;;  %v1454_v14 = vld [vmem:[%s4069_s5 + $0x30] sm:$0xff] }
 0x117   : > { %v2453_v22 = vpop.f32.mrf.mxu1 }
 0x118   : > { %v705_v23 = vpop.f32.mrf.mxu0  ;;  %v3764_v22 = vsub.f32 %v1455_v62, %v3755_v10 }
 0x119   : > { %v706_v31 = vadd.f32 %v705_v23, %v629_v15  ;;  %v3766_v23 = vand.u32 4294901760, %v1454_v14 }
 0x11a   : > { %v2460_v20 = vpop.f32.mrf.mxu0  ;;  %v778_v5 = vpop.f32.mrf.mxu1 }
 0x11b   : > { %v779_v63 = vadd.f32 %v778_v5, %v706_v31  ;;  %v1453_v31 = vld [vmem:[%s4069_s5 + $0x28] sm:$0xff] }
 0x11c   : > { %v2467_v59 = vpop.f32.mrf.mxu1 }
 0x11d   : > { %v782_v40 = vmax.f32 %v779_v63, 0.0 }
 0x11f   : > { %v3472_v24 = vand.u32 4294901760, %v782_v40 }
 0x121   : > { %v3475_v35 = vsub.f32 %v782_v40, %v3472_v24  ;;  %2536 = vmatmul.mubr.f32.vlgmr.msra.gmra.mxu1 %v3472_v24 }
 0x122   : > { %2574 = vmatpush3.msra.mxu1 %v3206_v16  ;;  %2605 = vmatprep.mubr.msk.f32.mxu1 %vm3041_vm0, %v3040_v0 }
 0x123   : > { %v889_v39 = vand.u32 4294901760, %v3475_v35  ;;  %2575 = vmatprep.subr.mxu1 %v3040_v0 }
 0x124   : > { %2576 = vmatpush3.msra.mxu1 %v3211_v21 }
 0x125   : > { %v890_v59 = vsub.f32 %v3475_v35, %v889_v39  ;;  %2577 = vmatprep.subr.mxu1 %v3040_v0 }
 0x126   : > { %2578 = vmatpush3.msra.mxu1 %v3219_v27 }
 0x127   : > { %2579 = vmatprep.subr.mxu1 %v3040_v0  ;;  %v891_v40 = vand.u32 4294901760, %v890_v59  ;;  %v3776_v59 = vsub.f32 %v1454_v14, %v3766_v23 }
 0x128   : > { %2580 = vmatpush3.msra.mxu1 %v3228_v30 }
 0x129   : > { %2581 = vmatprep.subr.mxu1 %v3040_v0  ;;  %2501 = vmatmul.mubr.f32.vlgmr.msra.gmra.mxu0 %v891_v40  ;;  %v3778_v40 = vand.u32 4294901760, %v1453_v31 }
 0x12a   : > { %2539 = vmatpush3.msra.mxu0 %v3217_v26  ;;  %2582 = vmatpush3.msra.mxu1 %v3239_v34  ;;  %v4095_v26 = vand.u32 4294901760, %v3414_v48 }
 0x12b   : > { %2540 = vmatprep.subr.mxu0 %v3040_v0  ;;  %2583 = vmatprep.subr.mxu1 %v3040_v0 }
 0x12c   : > { %2541 = vmatpush3.msra.mxu0 %v3226_v29  ;;  %2584 = vmatpush3.msra.mxu1 %v3252_v38  ;;  %v4097_v29 = vand.u32 4294901760, %v3437_v1 }
 0x12d   : > { %2542 = vmatprep.subr.mxu0 %v3040_v0  ;;  %2585 = vmatprep.subr.mxu1 %v3040_v0 }
 0x12e   : > { %2543 = vmatpush3.msra.mxu0 %v3237_v33  ;;  %2586 = vmatpush3.msra.mxu1 %v3267_v43 }
 0x12f   : > { %2544 = vmatprep.subr.mxu0 %v3040_v0  ;;  %2587 = vmatprep.subr.mxu1 %v3040_v0 }
 0x130   : > { %2545 = vmatpush3.msra.mxu0 %v3250_v37  ;;  %2588 = vmatpush3.msra.mxu1 %v3279_v47 }
 0x131   : > { %2546 = vmatprep.subr.mxu0 %v3040_v0  ;;  %2589 = vmatprep.subr.mxu1 %v3040_v0 }
 0x132   : > { %2547 = vmatpush3.msra.mxu0 %v3265_v42  ;;  %2590 = vmatpush3.msra.mxu1 %v3352_v6  ;;  %v1459_v42 = vld [vmem:[%s4069_s5 + $0x58] sm:$0xff] }
 0x133   : > { %2548 = vmatprep.subr.mxu0 %v3040_v0  ;;  %2591 = vmatprep.subr.mxu1 %v3040_v0 }
 0x134   : > { %2549 = vmatpush3.msra.mxu0 %v3277_v46  ;;  %2592 = vmatpush3.msra.mxu1 %v3360_v9  ;;  %v3666_v46 = vand.u32 4294901760, %v1459_v42 }
 0x135   : > { %2550 = vmatprep.subr.mxu0 %v3040_v0  ;;  %2593 = vmatprep.subr.mxu1 %v3040_v0 }
 0x136   : > { %2551 = vmatpush3.msra.mxu0 %v3290_v51  ;;  %2594 = vmatpush3.msra.mxu1 %v3371_v13  ;;  %v1456_v51 = vld [vmem:[%s4069_s5 + $0x40] sm:$0xff] }
 0x137   : > { %2552 = vmatprep.subr.mxu0 %v3040_v0  ;;  %2595 = vmatprep.subr.mxu1 %v3040_v0 }
 0x138   : > { %2553 = vmatpush3.msra.mxu0 %v3302_v55  ;;  %2596 = vmatpush3.msra.mxu1 %v3385_v19 }
 0x139   : > { %2554 = vmatprep.subr.mxu0 %v3040_v0  ;;  %2597 = vmatprep.subr.mxu1 %v3040_v0 }
 0x13a   : > { %2555 = vmatpush3.msra.mxu0 %v3358_v8  ;;  %2598 = vmatpush3.msra.mxu1 %v3400_v28 }
 0x13b   : > { %2556 = vmatprep.subr.mxu0 %v3040_v0  ;;  %2599 = vmatprep.subr.mxu1 %v3040_v0 }
 0x13c   : > { %2557 = vmatpush3.msra.mxu0 %v3369_v12  ;;  %2600 = vmatpush3.msra.mxu1 %v3410_v44 }
 0x13d   : > { %2558 = vmatprep.subr.mxu0 %v3040_v0  ;;  %2601 = vmatprep.subr.mxu1 %v3040_v0 }
 0x13e   : > { %2559 = vmatpush3.msra.mxu0 %v3383_v18  ;;  %2602 = vmatpush3.msra.mxu1 %v3426_v57 }
 0x13f   : > { %2560 = vmatprep.subr.mxu0 %v3040_v0  ;;  %2603 = vmatprep.subr.mxu1 %v3040_v0 }
 0x140   : > { %2561 = vmatpush3.msra.mxu0 %v3397_v25  ;;  %2604 = vmatpush3.msra.mxu1 %v3439_v2 }
 0x141   : > { %2562 = vmatprep.subr.mxu0 %v3040_v0  ;;  %2606 = vmatmul.mubr.f32.vlgmr.msra.gmra.mxu1 %v889_v39  ;;  %v1621_v39 = vand.u32 4294901760, %v3764_v22 }
 0x142   : > { %2643 = vmatprep.subr.mxu1 %v3040_v0  ;;  %2563 = vmatpush3.msra.mxu0 %v3414_v48 }
 0x143   : > { %2644 = vmatpush3.msra.mxu1 %v3206_v16  ;;  %2564 = vmatprep.subr.mxu0 %v3040_v0  ;;  %v4093_v16 = vand.u32 4294901760, %v3383_v18 }
 0x144   : > { %2645 = vmatprep.subr.mxu1 %v3040_v0  ;;  %2565 = vmatpush3.msra.mxu0 %v3424_v56 }
 0x145   : > { %2646 = vmatpush3.msra.mxu1 %v3211_v21  ;;  %2566 = vmatprep.subr.mxu0 %v3040_v0  ;;  %v4094_v21 = vand.u32 4294901760, %v3397_v25 }
 0x146   : > { %2647 = vmatprep.subr.mxu1 %v3040_v0  ;;  %2567 = vmatpush3.msra.mxu0 %v3437_v1 }
 0x147   : > { %2648 = vmatpush3.msra.mxu1 %v3219_v27  ;;  %2568 = vmatprep.subr.mxu0 %v3040_v0  ;;  %v4096_v27 = vand.u32 4294901760, %v3424_v56 }
 0x148   : > { %2649 = vmatprep.subr.mxu1 %v3040_v0  ;;  %2569 = vmatpush3.msra.mxu0 %v3452_v7 }
 0x149   : > { %2570 = vmatprep.mubr.msk.f32.mxu0 %vm3041_vm0, %v3040_v0  ;;  %2650 = vmatpush3.msra.mxu1 %v3228_v30  ;;  %v4098_v30 = vand.u32 4294901760, %v3452_v7 }
 0x14a   : > { %2571 = vmatmul.mubr.f32.vlgmr.msra.gmra.mxu0 %v3475_v35  ;;  %2608 = vmatprep.subr.mxu0 %v3040_v0 }
 0x14b   : > { %2651 = vmatprep.subr.mxu1 %v3040_v0  ;;  %2609 = vmatpush3.msra.mxu0 %v900_v32  ;;  %v1463_v32 = vld [vmem:[%s4069_s5 + $0x78] sm:$0xff] }
 0x14c   : > { %2652 = vmatpush3.msra.mxu1 %v3239_v34  ;;  %2610 = vmatprep.subr.mxu0 %v3040_v0  ;;  %v3642_v33 = vand.u32 4294901760, %v1463_v32  ;;  %v1462_v34 = vld [vmem:[%s4069_s5 + $0x70] sm:$0xff] }
 0x14d   : > { %2653 = vmatprep.subr.mxu1 %v3040_v0  ;;  %2611 = vmatpush3.msra.mxu0 %v907_v36  ;;  %v3650_v37 = vand.u32 4294901760, %v1462_v34 }
 0x14e   : > { %2654 = vmatpush3.msra.mxu1 %v3252_v38  ;;  %2612 = vmatprep.subr.mxu0 %v3040_v0  ;;  %v3648_v36 = vsub.f32 %v1463_v32, %v3642_v33  ;;  %v1461_v38 = vld [vmem:[%s4069_s5 + $0x68] sm:$0xff] }
 0x14f   : > { %2655 = vmatprep.subr.mxu1 %v3040_v0  ;;  %2613 = vmatpush3.msra.mxu0 %v914_v41  ;;  %v1460_v41 = vld [vmem:[%s4069_s5 + $0x60] sm:$0xff]  ;;  %v3680_v55 = vsub.f32 %v1462_v34, %v3650_v37 }
 0x150   : > { %2656 = vmatpush3.msra.mxu1 %v3267_v43  ;;  %2614 = vmatprep.subr.mxu0 %v3040_v0  ;;  %v3662_v43 = vand.u32 4294901760, %v1461_v38 }
 0x151   : > { %2657 = vmatprep.subr.mxu1 %v3040_v0  ;;  %2615 = vmatpush3.msra.mxu0 %v921_v45  ;;  %v3664_v45 = vand.u32 4294901760, %v1460_v41 }
 0x152   : > { %2658 = vmatpush3.msra.mxu1 %v3279_v47  ;;  %2616 = vmatprep.subr.mxu0 %v3040_v0  ;;  %v1458_v47 = vld [vmem:[%s4069_s5 + $0x50] sm:$0xff] }
 0x153   : > { %2659 = vmatprep.subr.mxu1 %v3040_v0  ;;  %2617 = vmatpush3.msra.mxu0 %v928_v50  ;;  %v1457_v50 = vld [vmem:[%s4069_s5 + $0x48] sm:$0xff]  ;;  %v3691_v8 = vsub.f32 %v1460_v41, %v3664_v45 }
 0x154   : > { %2660 = vmatpush3.msra.mxu1 %v3352_v6  ;;  %2618 = vmatprep.subr.mxu0 %v3040_v0  ;;  %v3688_v6 = vsub.f32 %v1461_v38, %v3662_v43 }
 0x155   : > { %2661 = vmatprep.subr.mxu1 %v3040_v0  ;;  %2619 = vmatpush3.msra.mxu0 %v935_v54  ;;  %v1565_v54 = vand.u32 4294901760, %v3648_v36 }
 0x156   : > { %2662 = vmatpush3.msra.mxu1 %v3360_v9  ;;  %2620 = vmatprep.subr.mxu0 %v3040_v0  ;;  %v3694_v9 = vsub.f32 %v1459_v42, %v3666_v46 }
 0x157   : > { %2663 = vmatprep.subr.mxu1 %v3040_v0  ;;  %2621 = vmatpush3.msra.mxu0 %v942_v58  ;;  %v3683_v58 = vand.u32 4294901760, %v1458_v47  ;;  %v1566_v12 = vsub.f32 %v3648_v36, %v1565_v54 }
 0x158   : > { %2664 = vmatpush3.msra.mxu1 %v3371_v13  ;;  %2622 = vmatprep.subr.mxu0 %v3040_v0  ;;  %v1572_v13 = vand.u32 4294901760, %v3680_v55  ;;  %v1593_v25 = vand.u32 4294901760, %v3694_v9 }
 0x159   : > { %2665 = vmatprep.subr.mxu1 %v3040_v0  ;;  %2623 = vmatpush3.msra.mxu0 %v949_v61  ;;  %v3685_v61 = vand.u32 4294901760, %v1457_v50 }
 0x15a   : > { %2666 = vmatpush3.msra.mxu1 %v3385_v19  ;;  %2624 = vmatprep.subr.mxu0 %v3040_v0  ;;  %v1579_v19 = vand.u32 4294901760, %v3688_v6 }
 0x15b   : > { %2667 = vmatprep.subr.mxu1 %v3040_v0  ;;  %2625 = vmatpush3.msra.mxu0 %v956_v11  ;;  %v3697_v11 = vand.u32 4294901760, %v1456_v51  ;;  %v3708_v18 = vsub.f32 %v1457_v50, %v3685_v61 }
 0x15c   : > { %2668 = vmatpush3.msra.mxu1 %v3400_v28  ;;  %2626 = vmatprep.subr.mxu0 %v3040_v0  ;;  %v1567_v28 = vand.u32 4294901760, %v1566_v12 }
 0x15d   : > { %2669 = vmatprep.subr.mxu1 %v3040_v0  ;;  %2627 = vmatpush3.msra.mxu0 %v963_v17  ;;  %v3704_v17 = vsub.f32 %v1458_v47, %v3683_v58  ;;  %v3720_v56 = vsub.f32 %v1456_v51, %v3697_v11  ;;  %v1607_v5 = vand.u32 4294901760, %v3708_v18  ;;  %v1450_v47 = vld [vmem:[%s4069_s5 + $0x10] sm:$0xff] }
 0x15e   : > { %2670 = vmatpush3.msra.mxu1 %v3410_v44  ;;  %2628 = vmatprep.subr.mxu0 %v3040_v0  ;;  %v1573_v44 = vsub.f32 %v3680_v55, %v1572_v13 }
 0x15f   : > { %2671 = vmatprep.subr.mxu1 %v3040_v0  ;;  %2629 = vmatpush3.msra.mxu0 %v4093_v16  ;;  %v1600_v48 = vand.u32 4294901760, %v3704_v17  ;;  %v1614_v52 = vand.u32 4294901760, %v3720_v56  ;;  %v1608_v60 = vsub.f32 %v3708_v18, %v1607_v5  ;;  %v1452_v16 = vld [vmem:[%s4069_s5 + $0x20] sm:$0xff] }
 0x160   : > { %2672 = vmatpush3.msra.mxu1 %v3426_v57  ;;  %2630 = vmatprep.subr.mxu0 %v3040_v0  ;;  %v1580_v57 = vsub.f32 %v3688_v6, %v1579_v19  ;;  %v1574_v1 = vand.u32 4294901760, %v1573_v44 }
 0x161   : > { %2673 = vmatprep.subr.mxu1 %v3040_v0  ;;  %2631 = vmatpush3.msra.mxu0 %v4094_v21  ;;  %v1601_v49 = vsub.f32 %v3704_v17, %v1600_v48  ;;  %v1615_v4 = vsub.f32 %v3720_v56, %v1614_v52  ;;  %v1609_v15 = vand.u32 4294901760, %v1608_v60  ;;  %v1622_v21 = vsub.f32 %v3764_v22, %v1621_v39 }
 0x162   : > { %2674 = vmatpush3.msra.mxu1 %v3439_v2  ;;  %2675 = vmatprep.mubr.msk.f32.mxu1 %vm3041_vm0, %v3040_v0  ;;  %v1594_v2 = vsub.f32 %v3694_v9, %v1593_v25  ;;  %v1581_v7 = vand.u32 4294901760, %v1580_v57  ;;  %v1449_v57 = vld [vmem:[%s4069_s5 + $0x8] sm:$0xff] }
 0x163   : > { %2632 = vmatprep.subr.mxu0 %v3040_v0  ;;  %2676 = vmatmul.mubr.f32.vlgmr.msra.gmra.mxu1 %v3472_v24  ;;  %v1602_v3 = vand.u32 4294901760, %v1601_v49  ;;  %v1616_v35 = vand.u32 4294901760, %v1615_v4  ;;  %v1623_v32 = vand.u32 4294901760, %v1622_v21  ;;  %v1448_v49 = vld [vmem:[%s4069_s5] sm:$0xff] }
 0x164   : > { %2633 = vmatpush3.msra.mxu0 %v4095_v26  ;;  %2640 = vmatprep.mubr.msk.f32.mxu0 %vm3041_vm0, %v3040_v0  ;;  %v1595_v53 = vand.u32 4294901760, %v1594_v2  ;;  %v1628_v26 = vand.u32 4294901760, %v3776_v59 }
 0x165   : > { %2634 = vmatprep.subr.mxu0 %v3040_v0  ;;  %2713 = vmatprep.subr.mxu1 %v3040_v0 }
 0x166   : > { %2635 = vmatpush3.msra.mxu0 %v4096_v27  ;;  %2745 = vmatprep.mubr.msk.f32.mxu1 %vm3041_vm0, %v3040_v0  ;;  %v3791_v27 = vsub.f32 %v1453_v31, %v3778_v40  ;;  %v1629_v34 = vsub.f32 %v3776_v59, %v1628_v26 }
 0x167   : > { %2636 = vmatprep.subr.mxu0 %v3040_v0  ;;  %2714 = vmatpush3.msra.mxu1 %v1567_v28  ;;  %v3820_v28 = vand.u32 4294901760, %v1450_v47 }
 0x168   : > { %2637 = vmatpush3.msra.mxu0 %v4097_v29  ;;  %2715 = vmatprep.subr.mxu1 %v3040_v0  ;;  %v3793_v29 = vand.u32 4294901760, %v1452_v16  ;;  %v1635_v38 = vand.u32 4294901760, %v3791_v27  ;;  %v1630_v50 = vand.u32 4294901760, %v1629_v34 }
 0x169   : > { %2638 = vmatprep.subr.mxu0 %v3040_v0  ;;  %2716 = vmatpush3.msra.mxu1 %v1574_v1  ;;  %v3834_v2 = vsub.f32 %v1450_v47, %v3820_v28 }
 0x16a   : > { %2639 = vmatpush3.msra.mxu0 %v4098_v30  ;;  %2717 = vmatprep.subr.mxu1 %v3040_v0  ;;  %v1451_v30 = vld [vmem:[%s4069_s5 + $0x18] sm:$0xff]  ;;  %v3806_v41 = vsub.f32 %v1452_v16, %v3793_v29  ;;  %v1636_v51 = vsub.f32 %v3791_v27, %v1635_v38 }
 0x16b   : > { %2641 = vmatmul.mubr.f32.vlgmr.msra.gmra.mxu0 %v3472_v24  ;;  %2678 = vmatprep.subr.mxu0 %v3040_v0  ;;  %v1586_v24 = vand.u32 4294901760, %v3691_v8  ;;  %v3810_v42 = vand.u32 4294901760, %v1451_v30  ;;  %v4083_v60 = vand.u32 4294901760, %v3834_v2 }
 0x16c   : > { %2710 = vmatprep.mubr.msk.f32.mxu0 %vm3041_vm0, %v3040_v0  ;;  %2679 = vmatpush3.msra.mxu0 %v3642_v33  ;;  %v1642_v12 = vand.u32 4294901760, %v3806_v41 }
 0x16d   : > { %2680 = vmatprep.subr.mxu0 %v3040_v0  ;;  %v1587_v63 = vsub.f32 %v3691_v8, %v1586_v24  ;;  %2718 = vmatpush3.msra.mxu1 %v1581_v7  ;;  %v3824_v44 = vsub.f32 %v1451_v30, %v3810_v42  ;;  %v3836_v7 = vand.u32 4294901760, %v1449_v57  ;;  %v1657_v14 = vsub.f32 %v3834_v2, %v4083_v60 }
 0x16e   : > { %2681 = vmatpush3.msra.mxu0 %v3650_v37  ;;  %2719 = vmatprep.subr.mxu1 %v3040_v0  ;;  %v1643_v1 = vsub.f32 %v3806_v41, %v1642_v12 }
 0x16f   : > { %2682 = vmatprep.subr.mxu0 %v3040_v0  ;;  %v1588_v20 = vand.u32 4294901760, %v1587_v63  ;;  %v1637_v63 = vand.u32 4294901760, %v1636_v51  ;;  %v3847_v62 = vsub.f32 %v1449_v57, %v3836_v7  ;;  %v1658_v16 = vand.u32 4294901760, %v1657_v14  ;;  %v2200_v14 = vld [vmem:[%s4068_s4] ss:$0 sm:$0xff] }
 0x170   : > { %2683 = vmatpush3.msra.mxu0 %v3662_v43 }
 0x171   : > { %2684 = vmatprep.subr.mxu0 %v3040_v0  ;;  %2720 = vmatpush3.msra.mxu1 %v1588_v20  ;;  %v4084_v20 = vand.u32 4294901760, %v3824_v44 }
 0x172   : > { %2685 = vmatpush3.msra.mxu0 %v3664_v45  ;;  %2721 = vmatprep.subr.mxu1 %v3040_v0 }
 0x173   : > { %2686 = vmatprep.subr.mxu0 %v3040_v0  ;;  %2722 = vmatpush3.msra.mxu1 %v1595_v53  ;;  %v1644_v53 = vand.u32 4294901760, %v1643_v1  ;;  %v1650_v4 = vsub.f32 %v3824_v44, %v4084_v20 }
 0x174   : > { %2687 = vmatpush3.msra.mxu0 %v3666_v46  ;;  %2723 = vmatprep.subr.mxu1 %v3040_v0 }
 0x175   : > { %2688 = vmatprep.subr.mxu0 %v3040_v0  ;;  %2724 = vmatpush3.msra.mxu1 %v1602_v3  ;;  %v3849_v3 = vand.u32 4294901760, %v1448_v49 }
 0x176   : > { %2689 = vmatpush3.msra.mxu0 %v3683_v58  ;;  %2725 = vmatprep.subr.mxu1 %v3040_v0 }
 0x177   : > { %2690 = vmatprep.subr.mxu0 %v3040_v0  ;;  %2726 = vmatpush3.msra.mxu1 %v1609_v15  ;;  %v4082_v15 = vand.u32 4294901760, %v3847_v62  ;;  %v3862_v31 = vsub.f32 %v1448_v49, %v3849_v3 }
 0x178   : > { %2691 = vmatpush3.msra.mxu0 %v3685_v61  ;;  %2727 = vmatprep.subr.mxu1 %v3040_v0 }
 0x179   : > { %2692 = vmatprep.subr.mxu0 %v3040_v0  ;;  %2728 = vmatpush3.msra.mxu1 %v1616_v35  ;;  %v1651_v35 = vand.u32 4294901760, %v1650_v4  ;;  %v1664_v21 = vsub.f32 %v3847_v62, %v4082_v15  ;;  %v4081_v30 = vand.u32 4294901760, %v3862_v31 }
 0x17a   : > { %2693 = vmatpush3.msra.mxu0 %v3697_v11  ;;  %2729 = vmatprep.subr.mxu1 %v3040_v0 }
 0x17b   : > { %2694 = vmatprep.subr.mxu0 %v3040_v0  ;;  %2730 = vmatpush3.msra.mxu1 %v1623_v32  ;;  %v1665_v32 = vand.u32 4294901760, %v1664_v21  ;;  %v1671_v34 = vsub.f32 %v3862_v31, %v4081_v30 }
 0x17c   : > { %2695 = vmatpush3.msra.mxu0 %v3755_v10  ;;  %2731 = vmatprep.subr.mxu1 %v3040_v0 }
 0x17d   : > { %2696 = vmatprep.subr.mxu0 %v3040_v0  ;;  %2732 = vmatpush3.msra.mxu1 %v1630_v50  ;;  %v1672_v47 = vand.u32 4294901760, %v1671_v34 }
 0x17e   : > { %2697 = vmatpush3.msra.mxu0 %v3766_v23  ;;  %2733 = vmatprep.subr.mxu1 %v3040_v0 }
 0x17f   : > { %2698 = vmatprep.subr.mxu0 %v3040_v0  ;;  %2734 = vmatpush3.msra.mxu1 %v1637_v63 }
 0x180   : > { %2699 = vmatpush3.msra.mxu0 %v3778_v40  ;;  %2735 = vmatprep.subr.mxu1 %v3040_v0 }
 0x181   : > { %2700 = vmatprep.subr.mxu0 %v3040_v0  ;;  %2736 = vmatpush3.msra.mxu1 %v1644_v53 }
 0x182   : > { %2701 = vmatpush3.msra.mxu0 %v3793_v29  ;;  %2737 = vmatprep.subr.mxu1 %v3040_v0 }
 0x183   : > { %2702 = vmatprep.subr.mxu0 %v3040_v0  ;;  %2738 = vmatpush3.msra.mxu1 %v1651_v35 }
 0x184   : > { %2703 = vmatpush3.msra.mxu0 %v3810_v42  ;;  %2739 = vmatprep.subr.mxu1 %v3040_v0 }
 0x185   : > { %2704 = vmatprep.subr.mxu0 %v3040_v0  ;;  %2740 = vmatpush3.msra.mxu1 %v1658_v16 }
 0x186   : > { %2705 = vmatpush3.msra.mxu0 %v3820_v28  ;;  %2741 = vmatprep.subr.mxu1 %v3040_v0 }
 0x187   : > { %2706 = vmatprep.subr.mxu0 %v3040_v0  ;;  %2742 = vmatpush3.msra.mxu1 %v1665_v32 }
 0x188   : > { %2707 = vmatpush3.msra.mxu0 %v3836_v7  ;;  %2743 = vmatprep.subr.mxu1 %v3040_v0 }
 0x189   : > { %2708 = vmatprep.subr.mxu0 %v3040_v0  ;;  %2744 = vmatpush3.msra.mxu1 %v1672_v47 }
 0x18a   : > { %2709 = vmatpush3.msra.mxu0 %v3849_v3  ;;  %2783 = vmatprep.subr.mxu1 %v3040_v0 }
 0x18b   : > { %2748 = vmatprep.subr.mxu0 %v3040_v0 }
 0x1e1   : > { %v1044_v50 = vpop.f32.mrf.mxu1 }
 0x1e3   : > { %v2537_v51 = vpop.f32.mrf.mxu1 }
 0x1e9   : > { %v893_v57 = vpop.f32.mrf.mxu0 }
 0x1ea   : > { %v894_v35 = vadd.f32 %v2200_v14, %v893_v57 }
 0x1eb   : > { %v2502_v63 = vpop.f32.mrf.mxu0 }
 0x1ec   : > { %v1045_v21 = vadd.f32 %v1044_v50, %v894_v35 }
 0x201   : > { %v1237_v1 = vpop.f32.mrf.mxu1 }
 0x203   : > { %v2607_v49 = vpop.f32.mrf.mxu1 }
 0x20a   : > { %v1148_v53 = vpop.f32.mrf.mxu0 }
 0x20b   : > { %v1149_v34 = vadd.f32 %v1148_v53, %v1045_v21 }
 0x20c   : > { %v2572_v4 = vpop.f32.mrf.mxu0 }
 0x20d   : > { %v1238_v47 = vadd.f32 %v1237_v1, %v1149_v34 }
 0x223   : > { %v1443_v16 = vpop.f32.mrf.mxu1 }
 0x225   : > { %v2677_v32 = vpop.f32.mrf.mxu1 }
 0x22b   : > { %v1356_v30 = vpop.f32.mrf.mxu0 }
 0x22c   : > { %v1357_v15 = vadd.f32 %v1356_v30, %v1238_v47 }
 0x22d   : > { %v2642_v60 = vpop.f32.mrf.mxu0 }
 0x22e   : > { %v1444_v51 = vadd.f32 %v1443_v16, %v1357_v15 }
 0x230   : > { %v1447_v20 = vmax.f32 %v1444_v51, 0.0 }
 0x232   : > { %v3882_v63 = vand.u32 4294901760, %v1447_v20 }
 0x234   : > { %v3885_v49 = vsub.f32 %v1447_v20, %v3882_v63  ;;  %2746 = vmatmul.mubr.f32.vlgmr.msra.gmra.mxu1 %v3882_v63 }
 0x235   : > { %2784 = vmatpush3.msra.mxu1 %v3642_v33  ;;  %2815 = vmatprep.mubr.msk.f32.mxu1 %vm3041_vm0, %v3040_v0 }
 0x236   : > { %v1554_v50 = vand.u32 4294901760, %v3885_v49  ;;  %2785 = vmatprep.subr.mxu1 %v3040_v0 }
 0x237   : > { %2786 = vmatpush3.msra.mxu1 %v3650_v37 }
 0x238   : > { %2787 = vmatprep.subr.mxu1 %v3040_v0  ;;  %v1555_v60 = vsub.f32 %v3885_v49, %v1554_v50 }
 0x239   : > { %2788 = vmatpush3.msra.mxu1 %v3662_v43 }
 0x23a   : > { %2789 = vmatprep.subr.mxu1 %v3040_v0  ;;  %v1556_v20 = vand.u32 4294901760, %v1555_v60 }
 0x23b   : > { %2790 = vmatpush3.msra.mxu1 %v3664_v45 }
 0x23c   : > { %2791 = vmatprep.subr.mxu1 %v3040_v0  ;;  %2711 = vmatmul.mubr.f32.vlgmr.msra.gmra.mxu0 %v1556_v20 }
 0x23d   : > { %2749 = vmatpush3.msra.mxu0 %v3648_v36  ;;  %2792 = vmatpush3.msra.mxu1 %v3666_v46  ;;  %v4100_v36 = vand.u32 4294901760, %v3834_v2 }
 0x23e   : > { %2750 = vmatprep.subr.mxu0 %v3040_v0  ;;  %2793 = vmatprep.subr.mxu1 %v3040_v0 }
 0x23f   : > { %2751 = vmatpush3.msra.mxu0 %v3680_v55  ;;  %2794 = vmatpush3.msra.mxu1 %v3683_v58 }
 0x240   : > { %2752 = vmatprep.subr.mxu0 %v3040_v0  ;;  %2795 = vmatprep.subr.mxu1 %v3040_v0 }
 0x241   : > { %2753 = vmatpush3.msra.mxu0 %v3688_v6  ;;  %2796 = vmatpush3.msra.mxu1 %v3685_v61 }
 0x242   : > { %2754 = vmatprep.subr.mxu0 %v3040_v0  ;;  %2797 = vmatprep.subr.mxu1 %v3040_v0 }
 0x243   : > { %2755 = vmatpush3.msra.mxu0 %v3691_v8  ;;  %2798 = vmatpush3.msra.mxu1 %v3697_v11 }
 0x244   : > { %2756 = vmatprep.subr.mxu0 %v3040_v0  ;;  %2799 = vmatprep.subr.mxu1 %v3040_v0 }
 0x245   : > { %2757 = vmatpush3.msra.mxu0 %v3694_v9  ;;  %2800 = vmatpush3.msra.mxu1 %v3755_v10  ;;  %v2201_v9 = vld [vmem:[%s4070_s6] ss:$0 sm:$0xff] }
 0x246   : > { %2758 = vmatprep.subr.mxu0 %v3040_v0  ;;  %2801 = vmatprep.subr.mxu1 %v3040_v0 }
 0x247   : > { %2759 = vmatpush3.msra.mxu0 %v3704_v17  ;;  %2802 = vmatpush3.msra.mxu1 %v3766_v23 }
 0x248   : > { %2760 = vmatprep.subr.mxu0 %v3040_v0  ;;  %2803 = vmatprep.subr.mxu1 %v3040_v0 }
 0x249   : > { %2761 = vmatpush3.msra.mxu0 %v3708_v18  ;;  %2804 = vmatpush3.msra.mxu1 %v3778_v40 }
 0x24a   : > { %2762 = vmatprep.subr.mxu0 %v3040_v0  ;;  %2805 = vmatprep.subr.mxu1 %v3040_v0 }
 0x24b   : > { %2763 = vmatpush3.msra.mxu0 %v3720_v56  ;;  %2806 = vmatpush3.msra.mxu1 %v3793_v29 }
 0x24c   : > { %2764 = vmatprep.subr.mxu0 %v3040_v0  ;;  %2807 = vmatprep.subr.mxu1 %v3040_v0 }
 0x24d   : > { %2765 = vmatpush3.msra.mxu0 %v3764_v22  ;;  %2808 = vmatpush3.msra.mxu1 %v3810_v42 }
 0x24e   : > { %2766 = vmatprep.subr.mxu0 %v3040_v0  ;;  %2809 = vmatprep.subr.mxu1 %v3040_v0 }
 0x24f   : > { %2767 = vmatpush3.msra.mxu0 %v3776_v59  ;;  %2810 = vmatpush3.msra.mxu1 %v3820_v28 }
 0x250   : > { %2768 = vmatprep.subr.mxu0 %v3040_v0  ;;  %2811 = vmatprep.subr.mxu1 %v3040_v0 }
 0x251   : > { %2769 = vmatpush3.msra.mxu0 %v3791_v27  ;;  %2812 = vmatpush3.msra.mxu1 %v3836_v7 }
 0x252   : > { %2770 = vmatprep.subr.mxu0 %v3040_v0  ;;  %2813 = vmatprep.subr.mxu1 %v3040_v0 }
 0x253   : > { %2771 = vmatpush3.msra.mxu0 %v3806_v41  ;;  %2814 = vmatpush3.msra.mxu1 %v3849_v3 }
 0x254   : > { %2772 = vmatprep.subr.mxu0 %v3040_v0  ;;  %2816 = vmatmul.mubr.f32.vlgmr.msra.gmra.mxu1 %v1554_v50 }
 0x255   : > { %2853 = vmatprep.subr.mxu1 %v3040_v0  ;;  %2773 = vmatpush3.msra.mxu0 %v3824_v44 }
 0x256   : > { %2854 = vmatpush3.msra.mxu1 %v3642_v33  ;;  %2774 = vmatprep.subr.mxu0 %v3040_v0  ;;  %v4099_v33 = vand.u32 4294901760, %v3824_v44 }
 0x257   : > { %2855 = vmatprep.subr.mxu1 %v3040_v0  ;;  %2775 = vmatpush3.msra.mxu0 %v3834_v2 }
 0x258   : > { %2856 = vmatpush3.msra.mxu1 %v3650_v37  ;;  %2776 = vmatprep.subr.mxu0 %v3040_v0  ;;  %v4101_v37 = vand.u32 4294901760, %v3847_v62 }
 0x259   : > { %2857 = vmatprep.subr.mxu1 %v3040_v0  ;;  %2777 = vmatpush3.msra.mxu0 %v3847_v62 }
 0x25a   : > { %2858 = vmatpush3.msra.mxu1 %v3662_v43  ;;  %2778 = vmatprep.subr.mxu0 %v3040_v0  ;;  %v4102_v43 = vand.u32 4294901760, %v3862_v31 }
 0x25b   : > { %2859 = vmatprep.subr.mxu1 %v3040_v0  ;;  %2779 = vmatpush3.msra.mxu0 %v3862_v31 }
 0x25c   : > { %2780 = vmatprep.mubr.msk.f32.mxu0 %vm3041_vm0, %v3040_v0  ;;  %2860 = vmatpush3.msra.mxu1 %v3664_v45 }
 0x25d   : > { %2781 = vmatmul.mubr.f32.vlgmr.msra.gmra.mxu0 %v3885_v49  ;;  %2818 = vmatprep.subr.mxu0 %v3040_v0 }
 0x25e   : > { %2861 = vmatprep.subr.mxu1 %v3040_v0  ;;  %2819 = vmatpush3.msra.mxu0 %v1565_v54 }
 0x25f   : > { %2862 = vmatpush3.msra.mxu1 %v3666_v46  ;;  %2820 = vmatprep.subr.mxu0 %v3040_v0 }
 0x260   : > { %2863 = vmatprep.subr.mxu1 %v3040_v0  ;;  %2821 = vmatpush3.msra.mxu0 %v1572_v13 }
 0x261   : > { %2864 = vmatpush3.msra.mxu1 %v3683_v58  ;;  %2822 = vmatprep.subr.mxu0 %v3040_v0 }
 0x262   : > { %2865 = vmatprep.subr.mxu1 %v3040_v0  ;;  %2823 = vmatpush3.msra.mxu0 %v1579_v19 }
 0x263   : > { %2866 = vmatpush3.msra.mxu1 %v3685_v61  ;;  %2824 = vmatprep.subr.mxu0 %v3040_v0 }
 0x264   : > { %2867 = vmatprep.subr.mxu1 %v3040_v0  ;;  %2825 = vmatpush3.msra.mxu0 %v1586_v24 }
 0x265   : > { %2868 = vmatpush3.msra.mxu1 %v3697_v11  ;;  %2826 = vmatprep.subr.mxu0 %v3040_v0 }
 0x266   : > { %2869 = vmatprep.subr.mxu1 %v3040_v0  ;;  %2827 = vmatpush3.msra.mxu0 %v1593_v25 }
 0x267   : > { %2870 = vmatpush3.msra.mxu1 %v3755_v10  ;;  %2828 = vmatprep.subr.mxu0 %v3040_v0 }
 0x268   : > { %2871 = vmatprep.subr.mxu1 %v3040_v0  ;;  %2829 = vmatpush3.msra.mxu0 %v1600_v48 }
 0x269   : > { %2872 = vmatpush3.msra.mxu1 %v3766_v23  ;;  %2830 = vmatprep.subr.mxu0 %v3040_v0 }
 0x26a   : > { %2873 = vmatprep.subr.mxu1 %v3040_v0  ;;  %2831 = vmatpush3.msra.mxu0 %v1607_v5 }
 0x26b   : > { %2874 = vmatpush3.msra.mxu1 %v3778_v40  ;;  %2832 = vmatprep.subr.mxu0 %v3040_v0 }
 0x26c   : > { %2875 = vmatprep.subr.mxu1 %v3040_v0  ;;  %2833 = vmatpush3.msra.mxu0 %v1614_v52 }
 0x26d   : > { %2876 = vmatpush3.msra.mxu1 %v3793_v29  ;;  %2834 = vmatprep.subr.mxu0 %v3040_v0 }
 0x26e   : > { %2877 = vmatprep.subr.mxu1 %v3040_v0  ;;  %2835 = vmatpush3.msra.mxu0 %v1621_v39 }
 0x26f   : > { %2878 = vmatpush3.msra.mxu1 %v3810_v42  ;;  %2836 = vmatprep.subr.mxu0 %v3040_v0 }
 0x270   : > { %2879 = vmatprep.subr.mxu1 %v3040_v0  ;;  %2837 = vmatpush3.msra.mxu0 %v1628_v26 }
 0x271   : > { %2880 = vmatpush3.msra.mxu1 %v3820_v28  ;;  %2838 = vmatprep.subr.mxu0 %v3040_v0 }
 0x272   : > { %2881 = vmatprep.subr.mxu1 %v3040_v0  ;;  %2839 = vmatpush3.msra.mxu0 %v1635_v38 }
 0x273   : > { %2882 = vmatpush3.msra.mxu1 %v3836_v7  ;;  %2840 = vmatprep.subr.mxu0 %v3040_v0 }
 0x274   : > { %2883 = vmatprep.subr.mxu1 %v3040_v0  ;;  %2841 = vmatpush3.msra.mxu0 %v1642_v12 }
 0x275   : > { %2884 = vmatpush3.msra.mxu1 %v3849_v3  ;;  %2885 = vmatprep.mubr.msk.f32.mxu1 %vm3041_vm0, %v3040_v0 }
 0x276   : > { %2842 = vmatprep.subr.mxu0 %v3040_v0  ;;  %2886 = vmatmul.mubr.f32.vlgmr.msra.gmra.mxu1 %v3882_v63 }
 0x277   : > { %2843 = vmatpush3.msra.mxu0 %v4099_v33  ;;  %2850 = vmatprep.mubr.msk.f32.mxu0 %vm3041_vm0, %v3040_v0 }
 0x278   : > { %2844 = vmatprep.subr.mxu0 %v3040_v0 }
 0x279   : > { %2845 = vmatpush3.msra.mxu0 %v4100_v36 }
 0x27a   : > { %2846 = vmatprep.subr.mxu0 %v3040_v0 }
 0x27b   : > { %2847 = vmatpush3.msra.mxu0 %v4101_v37 }
 0x27c   : > { %2848 = vmatprep.subr.mxu0 %v3040_v0 }
 0x27d   : > { %2849 = vmatpush3.msra.mxu0 %v4102_v43 }
 0x27e   : > { %2851 = vmatmul.mubr.f32.vlgmr.msra.gmra.mxu0 %v3882_v63 }
 0x2f4   : > { %v1709_v45 = vpop.f32.mrf.mxu1 }
 0x2f6   : > { %v2747_v46 = vpop.f32.mrf.mxu1 }
 0x2fc   : > { %v1558_v54 = vpop.f32.mrf.mxu0 }
 0x2fd   : > { %v1559_v11 = vadd.f32 %v2201_v9, %v1558_v54 }
 0x2fe   : > { %v2712_v55 = vpop.f32.mrf.mxu0 }
 0x2ff   : > { %v1710_v13 = vadd.f32 %v1709_v45, %v1559_v11 }
 0x314   : > { %v1902_v58 = vpop.f32.mrf.mxu1 }
 0x316   : > { %v2817_v61 = vpop.f32.mrf.mxu1 }
 0x31d   : > { %v1813_v6 = vpop.f32.mrf.mxu0 }
 0x31e   : > { %v1814_v18 = vadd.f32 %v1813_v6, %v1710_v13 }
 0x31f   : > { %v2782_v8 = vpop.f32.mrf.mxu0 }
 0x320   : > { %v1903_v19 = vadd.f32 %v1902_v58, %v1814_v18 }
 0x336   : > { %v2108_v0 = vpop.f32.mrf.mxu1 }
 0x338   : > { %v2887_v17 = vpop.f32.mrf.mxu1 }
 0x33e   : > { %v2021_v24 = vpop.f32.mrf.mxu0 }
 0x33f   : > { %v2022_v25 = vadd.f32 %v2021_v24, %v1903_v19 }
 0x340   : > { %v2852_v48 = vpop.f32.mrf.mxu0 }
 0x341   : > { %v2109_v56 = vadd.f32 %v2108_v0, %v2022_v25 }
 0x343   : > { %2113 = vst.msk [vmem:[%s308_s30] sm:$0xff] %vm2112_vm2, %v2109_v56 }
 0x344 PF: > { %p18_p7 = scmp.ge.s32.totalorder %s3126_s11, 4   ;;  %s4103_s24 = smov %s3026_s25 }
 0x345   : > { %s4104_s25 = smov %s3030_s26  ;;  %s4105_s26 = smov %s3143_s19 }
 0x346   : > { %s4106_s27 = smov %s3126_s11  ;;  %20 = sbr.rel (!%p18_p7) target bundleno = 4 (0x4), region = 92 }
 0x34b   :  { %2133 = vsyncpa [#allocation3], 1 }
 0x34c   :  { %2135 = vsyncpa [#allocation3 + $0x1], 1 }
 0x34d   :  { %2136 = vsyncpa [#allocation5], 1 }

</bundles_post_ra>
